<compile_context>
chip_gen: v7x
topology: tpu7x:2x2x1
jax: 0.10.0
libtpu: 0.0.40
codegen_flags: <defaults>
</compile_context>

<pallas_src>
from functools import partial

import jax
import jax.numpy as jnp
from jax import lax
from jax.experimental import pallas as pl
from jax.experimental.pallas import tpu as pltpu


# ---------------------------------------------------------------------------
# Kernel 1: Mobius elementwise transform + regularizer terms (single step).
# ---------------------------------------------------------------------------
def mobius_transform_kernel(lhs_ref, rel_ref, rhs_ref,
                            up_ref, reg_h_ref, reg_r_ref, reg_t_ref, *, rank):
    r = rank
    lhs = lhs_ref[...]          # (B, 2R)
    rel = rel_ref[...]          # (B, 8R)
    rhs = rhs_ref[...]          # (B, 2R)

    re_head, im_head = lhs[:, :r], lhs[:, r:2 * r]
    ra, ia = rel[:, 0 * r:1 * r], rel[:, 1 * r:2 * r]
    rb, ib = rel[:, 2 * r:3 * r], rel[:, 3 * r:4 * r]
    rc, ic = rel[:, 4 * r:5 * r], rel[:, 5 * r:6 * r]
    rd, idd = rel[:, 6 * r:7 * r], rel[:, 7 * r:8 * r]
    re_tail, im_tail = rhs[:, :r], rhs[:, r:2 * r]

    # Mobius transform (elementwise, VPU/EUP) — runs once per forward.
    re_a = re_head * ra - im_head * ia
    im_a = re_head * ia + im_head * ra
    re_top = re_a + rb
    im_top = im_a + ib
    re_c = re_head * rc - im_head * ic
    im_c = re_head * ic + im_head * rc
    re_dn = re_c + rd
    im_dn = im_c + idd
    # NOTE: like the PyTorch reference, no epsilon on the denominator (can NaN
    # if the denominator is exactly 0) — kept to match module semantics.
    dn = jnp.sqrt(re_dn * re_dn + im_dn * im_dn)
    up_re = (re_top * re_dn + im_top * im_dn) / dn
    up_im = (re_top * im_dn - im_top * re_dn) / dn

    # up = [up_re | up_im] written in place (no lane-concatenate relayout).
    up_ref[:, :r] = up_re
    up_ref[:, r:] = up_im

    reg_h_ref[...] = jnp.sqrt(re_head ** 2 + im_head ** 2)
    reg_r_ref[...] = jnp.sqrt(ra ** 2 + ia ** 2 + rc ** 2 + ic ** 2 +
                              rb ** 2 + ib ** 2 + rd ** 2 + idd ** 2)
    reg_t_ref[...] = jnp.sqrt(re_tail ** 2 + im_tail ** 2)


# ---------------------------------------------------------------------------
# Kernel 2: streaming score matmul (HBM-bound).
# ---------------------------------------------------------------------------
def mobius_score_kernel(up_ref, ent_ref, score_ref):
    """(bm, 2R) resident queries x one (tn, 2R) entity tile -> (bm, tn)."""
    # Contract feature axes (dim 1 of both) — no transpose of the table needed.
    score_ref[...] = lax.dot_general(
        up_ref[...], ent_ref[...],
        dimension_numbers=(((1,), (1,)), ((), ())),
        preferred_element_type=jnp.float32)


# ---------------------------------------------------------------------------
# Tile / VMEM sizing helpers.
# ---------------------------------------------------------------------------
def _round_up(x, m):
    return ((x + m - 1) // m) * m


def _pick_entity_tile(n_ent, tn_max):
    """Big lane-aligned entity tile, with >=2 (preferably even) grid steps so
    v7x megacore ('parallel' entity axis) stays balanced."""
    tn = min(_round_up(n_ent, 128), _round_up(max(tn_max, 128), 128))
    if n_ent > 256 and pl.cdiv(n_ent, tn) < 2:
        tn = _round_up(pl.cdiv(n_ent, 2), 128)
    tiles = pl.cdiv(n_ent, tn)
    if tiles > 1 and tiles % 2 == 1:
        tn_even = _round_up(pl.cdiv(n_ent, tiles + 1), 128)
        if tn_even >= 128 and pl.cdiv(n_ent, tn_even) % 2 == 0:
            tn = tn_even
    return max(tn, 128)


def _working_set_bytes(tn, bm, rank, itemsize):
    """Double-buffered entity tile + f32 score tile + resident query block."""
    return 2 * (tn * 2 * rank * itemsize      # entity table tile
                + bm * tn * 4                 # f32 score tile
                + bm * 2 * rank * itemsize)   # up (queries)


def _shrink_to_budget(tn, bm, rank, itemsize, budget_bytes):
    while tn > 128 and _working_set_bytes(tn, bm, rank, itemsize) > budget_bytes:
        tn = max(128, _round_up(tn // 2, 128))
    return tn


# ---------------------------------------------------------------------------
# Wrappers.
# ---------------------------------------------------------------------------
def make_scoring_table(ent_emb, rank, dtype=jnp.bfloat16):
    """Contiguous (N_ent, 2*rank) copy of the scoring columns.

    Materializing this once (optionally in bf16) makes every score-kernel DMA
    fully contiguous and, in bf16, halves the bytes streamed per entity — the
    big bandwidth lever when reused across forward calls.
    """
    return ent_emb[:, :2 * rank].astype(dtype)


def mobius_forward(x, ent_emb, rel_emb, rank, *, tn=8192, bm=256,
                   scoring_table=None):
    """Pallas implementation of MobiusESM.forward.

    x:             (B, 3) int32 triples (lhs, rel, rhs)
    ent_emb:       (N_ent, 8*rank) float32 entity table
    rel_emb:       (N_rel, 8*rank) float32 relation table
    scoring_table: optional contiguous (N_ent, 2*rank) table (e.g. bf16 from
                   make_scoring_table) streamed instead of ent_emb's columns.
    returns: scores (B, N_ent) f32, (reg_head, reg_rel, reg_tail) each (B, rank)
    """
    B = x.shape[0]
    n_ent, width = ent_emb.shape
    assert width == 8 * rank
    assert rank % 128 == 0, "rank must be lane-aligned (multiple of 128)"

    table = ent_emb if scoring_table is None else scoring_table
    if scoring_table is not None:
        assert scoring_table.shape == (n_ent, 2 * rank)
    score_dtype = table.dtype
    itemsize = jnp.dtype(score_dtype).itemsize

    # Batch tile: whole batch if small; otherwise 256-row tiles (entity tile
    # stays VMEM-resident across batch tiles since entity is the outer axis).
    bm_eff = B if B <= bm else _round_up(min(bm, 256), 8)

    tn_eff = _pick_entity_tile(n_ent, tn)
    tn_eff = _shrink_to_budget(tn_eff, bm_eff, rank, itemsize,
                               budget_bytes=36 << 20)
    working = _working_set_bytes(tn_eff, bm_eff, rank, itemsize)
    # Explicit scoped-VMEM limit (instead of a hard assert): big enough for the
    # tile plus headroom, capped below v7x's 64 MiB physical VMEM.
    vmem_limit = int(min(max(working + (8 << 20), 32 << 20), 48 << 20))

    # Glue: tiny (B-row) embedding gathers stay in plain JAX.
    lhs = ent_emb[x[:, 0], :2 * rank]          # (B, 2R)
    rel = rel_emb[x[:, 1]]                     # (B, 8R)
    rhs = ent_emb[x[:, 2], :2 * rank]          # (B, 2R)

    # --- Kernel 1: Mobius transform + regularizers (single grid step). ---
    up, reg_h, reg_r, reg_t = pl.pallas_call(
        partial(mobius_transform_kernel, rank=rank),
        out_shape=(
            jax.ShapeDtypeStruct((B, 2 * rank), jnp.float32),
            jax.ShapeDtypeStruct((B, rank), jnp.float32),
            jax.ShapeDtypeStruct((B, rank), jnp.float32),
            jax.ShapeDtypeStruct((B, rank), jnp.float32),
        ),
        grid=(1,),
        in_specs=[
            pl.BlockSpec((B, 2 * rank), lambda i: (0, 0)),
            pl.BlockSpec((B, 8 * rank), lambda i: (0, 0)),
            pl.BlockSpec((B, 2 * rank), lambda i: (0, 0)),
        ],
        out_specs=[
            pl.BlockSpec((B, 2 * rank), lambda i: (0, 0)),
            pl.BlockSpec((B, rank), lambda i: (0, 0)),
            pl.BlockSpec((B, rank), lambda i: (0, 0)),
            pl.BlockSpec((B, rank), lambda i: (0, 0)),
        ],
        compiler_params=pltpu.CompilerParams(
            dimension_semantics=("arbitrary",)),
    )(lhs, rel, rhs)

    # Match query dtype to the streamed table (bf16 x bf16 -> f32 MXU accum).
    if up.dtype != score_dtype:
        up = up.astype(score_dtype)

    # --- Kernel 2: streaming score matmul over the entity table. ---
    # Entity axis is the OUTER grid dim so each streamed entity tile is reused
    # across all batch tiles; cdiv grid + Pallas masking handles ragged tails.
    grid = (pl.cdiv(n_ent, tn_eff), pl.cdiv(B, bm_eff))
    scores = pl.pallas_call(
        mobius_score_kernel,
        out_shape=jax.ShapeDtypeStruct((B, n_ent), jnp.float32),
        grid=grid,
        in_specs=[
            pl.BlockSpec((bm_eff, 2 * rank), lambda j, b: (b, 0)),
            pl.BlockSpec((tn_eff, 2 * rank), lambda j, b: (j, 0)),
        ],
        out_specs=pl.BlockSpec((bm_eff, tn_eff), lambda j, b: (b, j)),
        compiler_params=pltpu.CompilerParams(
            dimension_semantics=("parallel", "parallel"),
            vmem_limit_bytes=vmem_limit),
    )(up, table)

    return scores, (reg_h, reg_r, reg_t)


def mobius_forward_ref(x, ent_emb, rel_emb, rank):
    """Pure-JAX reference mirroring the PyTorch forward."""
    r = rank
    lhs = ent_emb[x[:, 0]]
    rel = rel_emb[x[:, 1]]
    rhs = ent_emb[x[:, 2]]
    re_head, im_head = lhs[:, :r], lhs[:, r:2 * r]
    ra, ia = rel[:, 0 * r:1 * r], rel[:, 1 * r:2 * r]
    rb, ib = rel[:, 2 * r:3 * r], rel[:, 3 * r:4 * r]
    rc, ic = rel[:, 4 * r:5 * r], rel[:, 5 * r:6 * r]
    rd, idd = rel[:, 6 * r:7 * r], rel[:, 7 * r:8 * r]
    re_tail, im_tail = rhs[:, :r], rhs[:, r:2 * r]
    re_a = re_head * ra - im_head * ia
    im_a = re_head * ia + im_head * ra
    re_top, im_top = re_a + rb, im_a + ib
    re_c = re_head * rc - im_head * ic
    im_c = re_head * ic + im_head * rc
    re_dn, im_dn = re_c + rd, im_c + idd
    dn = jnp.sqrt(re_dn * re_dn + im_dn * im_dn)
    up_re = (re_top * re_dn + im_top * im_dn) / dn
    up_im = (re_top * im_dn - im_top * re_dn) / dn
    to_re, to_im = ent_emb[:, :r], ent_emb[:, r:2 * r]
    scores = up_re @ to_re.T + up_im @ to_im.T
    regs = (jnp.sqrt(re_head ** 2 + im_head ** 2),
            jnp.sqrt(ra ** 2 + ia ** 2 + rc ** 2 + ic ** 2 +
                     rb ** 2 + ib ** 2 + rd ** 2 + idd ** 2),
            jnp.sqrt(re_tail ** 2 + im_tail ** 2))
    return scores, regs


if __name__ == "__main__":
    # Small MobiusESM configuration: sizes=(n_ent, n_rel, n_ent), rank, init_size
    sizes = (512, 16, 512)
    rank = 128
    init_size = 1e-3
    B = 8

    key = jax.random.PRNGKey(0)
    k_ent, k_rel, k_x0, k_x1, k_x2 = jax.random.split(key, 5)

    # nn.Embedding default init is N(0,1); the module scales by init_size.
    ent_emb = (jax.random.normal(k_ent, (sizes[0], 8 * rank), jnp.float32)
               * init_size)
    rel_emb = (jax.random.normal(k_rel, (sizes[1], 8 * rank), jnp.float32)
               * init_size)

    x = jnp.stack([
        jax.random.randint(k_x0, (B,), 0, sizes[0]),
        jax.random.randint(k_x1, (B,), 0, sizes[1]),
        jax.random.randint(k_x2, (B,), 0, sizes[0]),
    ], axis=1).astype(jnp.int32)                  # (B, 3) triples

    ref_scores, (ref_h, ref_r, ref_t) = mobius_forward_ref(
        x, ent_emb, rel_emb, rank)

    # 1) Default f32 streaming path. The tile picker shrinks tn for this tiny
    #    table to give an even, multi-step entity grid (production keeps 8192).
    scores, (reg_h, reg_r, reg_t) = mobius_forward(x, ent_emb, rel_emb, rank)
    jax.block_until_ready(scores)
    assert scores.shape == (B, sizes[0])
    assert reg_h.shape == (B, rank)
    assert jnp.allclose(scores, ref_scores, rtol=1e-5, atol=1e-6)
    assert jnp.allclose(reg_h, ref_h, rtol=1e-5, atol=1e-6)
    assert jnp.allclose(reg_r, ref_r, rtol=1e-5, atol=1e-6)
    assert jnp.allclose(reg_t, ref_t, rtol=1e-5, atol=1e-6)

    # 2) Ragged entity grid: tn=384 does not divide N_ent=512 -> cdiv grid with
    #    a masked last block.
    scores_rag, _ = mobius_forward(x, ent_emb, rel_emb, rank, tn=384)
    jax.block_until_ready(scores_rag)
    assert jnp.allclose(scores_rag, ref_scores, rtol=1e-5, atol=1e-6)

    # 3) bf16 contiguous scoring table (halved HBM traffic, f32 MXU accum).
    tbl = make_scoring_table(ent_emb, rank, jnp.bfloat16)
    scores_bf16, _ = mobius_forward(x, ent_emb, rel_emb, rank,
                                    scoring_table=tbl)
    jax.block_until_ready(scores_bf16)
    assert jnp.allclose(scores_bf16, ref_scores, rtol=5e-2, atol=2e-6)

    print("KERNEL_OK")
</pallas_src>

<mosaic_0001>
module attributes {stable_mosaic.version = 11 : i64} {
  func.func @mobius_transform_kernel(%arg0: i32, %arg1: memref<8x256xf32, #tpu.memory_space<vmem>>, %arg2: memref<8x1024xf32, #tpu.memory_space<vmem>>, %arg3: memref<8x256xf32, #tpu.memory_space<vmem>>, %arg4: memref<8x256xf32, #tpu.memory_space<vmem>>, %arg5: memref<8x128xf32, #tpu.memory_space<vmem>>, %arg6: memref<8x128xf32, #tpu.memory_space<vmem>>, %arg7: memref<8x128xf32, #tpu.memory_space<vmem>>) attributes {dimension_semantics = [#tpu.dimension_semantics<arbitrary>], iteration_bounds = array<i64: 1>, scalar_prefetch = 0 : i64, scratch_operands = 0 : i64, tpu.core_type = #tpu.core_type<tc>, window_params = [{pipeline_mode = #tpu.pipeline_mode<synchronous>, transform_indices = @transform_0, window_bounds = array<i64: 8, 256>}, {pipeline_mode = #tpu.pipeline_mode<synchronous>, transform_indices = @transform_1, window_bounds = array<i64: 8, 1024>}, {pipeline_mode = #tpu.pipeline_mode<synchronous>, transform_indices = @transform_2, window_bounds = array<i64: 8, 256>}, {pipeline_mode = #tpu.pipeline_mode<synchronous>, transform_indices = @transform_3, window_bounds = array<i64: 8, 256>}, {pipeline_mode = #tpu.pipeline_mode<synchronous>, transform_indices = @transform_4, window_bounds = array<i64: 8, 128>}, {pipeline_mode = #tpu.pipeline_mode<synchronous>, transform_indices = @transform_5, window_bounds = array<i64: 8, 128>}, {pipeline_mode = #tpu.pipeline_mode<synchronous>, transform_indices = @transform_6, window_bounds = array<i64: 8, 128>}]} {
    %c0 = arith.constant 0 : index
    %c0_0 = arith.constant 0 : index
    %0 = vector.load %arg1[%c0, %c0_0] : memref<8x256xf32, #tpu.memory_space<vmem>>, vector<8x256xf32>
    %c0_1 = arith.constant 0 : index
    %c0_2 = arith.constant 0 : index
    %1 = vector.load %arg2[%c0_1, %c0_2] : memref<8x1024xf32, #tpu.memory_space<vmem>>, vector<8x1024xf32>
    %c0_3 = arith.constant 0 : index
    %c0_4 = arith.constant 0 : index
    %2 = vector.load %arg3[%c0_3, %c0_4] : memref<8x256xf32, #tpu.memory_space<vmem>>, vector<8x256xf32>
    %3 = vector.extract_strided_slice %0 {offsets = [0, 0], sizes = [8, 128], strides = [1, 1]} : vector<8x256xf32> to vector<8x128xf32>
    %4 = vector.extract_strided_slice %0 {offsets = [0, 128], sizes = [8, 128], strides = [1, 1]} : vector<8x256xf32> to vector<8x128xf32>
    %5 = vector.extract_strided_slice %1 {offsets = [0, 0], sizes = [8, 128], strides = [1, 1]} : vector<8x1024xf32> to vector<8x128xf32>
    %6 = vector.extract_strided_slice %1 {offsets = [0, 128], sizes = [8, 128], strides = [1, 1]} : vector<8x1024xf32> to vector<8x128xf32>
    %7 = vector.extract_strided_slice %1 {offsets = [0, 256], sizes = [8, 128], strides = [1, 1]} : vector<8x1024xf32> to vector<8x128xf32>
    %8 = vector.extract_strided_slice %1 {offsets = [0, 384], sizes = [8, 128], strides = [1, 1]} : vector<8x1024xf32> to vector<8x128xf32>
    %9 = vector.extract_strided_slice %1 {offsets = [0, 512], sizes = [8, 128], strides = [1, 1]} : vector<8x1024xf32> to vector<8x128xf32>
    %10 = vector.extract_strided_slice %1 {offsets = [0, 640], sizes = [8, 128], strides = [1, 1]} : vector<8x1024xf32> to vector<8x128xf32>
    %11 = vector.extract_strided_slice %1 {offsets = [0, 768], sizes = [8, 128], strides = [1, 1]} : vector<8x1024xf32> to vector<8x128xf32>
    %12 = vector.extract_strided_slice %1 {offsets = [0, 896], sizes = [8, 128], strides = [1, 1]} : vector<8x1024xf32> to vector<8x128xf32>
    %13 = vector.extract_strided_slice %2 {offsets = [0, 0], sizes = [8, 128], strides = [1, 1]} : vector<8x256xf32> to vector<8x128xf32>
    %14 = vector.extract_strided_slice %2 {offsets = [0, 128], sizes = [8, 128], strides = [1, 1]} : vector<8x256xf32> to vector<8x128xf32>
    %15 = arith.mulf %3, %5 : vector<8x128xf32>
    %16 = arith.mulf %4, %6 : vector<8x128xf32>
    %17 = arith.subf %15, %16 : vector<8x128xf32>
    %18 = arith.mulf %3, %6 : vector<8x128xf32>
    %19 = arith.mulf %4, %5 : vector<8x128xf32>
    %20 = arith.addf %18, %19 : vector<8x128xf32>
    %21 = arith.addf %17, %7 : vector<8x128xf32>
    %22 = arith.addf %20, %8 : vector<8x128xf32>
    %23 = arith.mulf %3, %9 : vector<8x128xf32>
    %24 = arith.mulf %4, %10 : vector<8x128xf32>
    %25 = arith.subf %23, %24 : vector<8x128xf32>
    %26 = arith.mulf %3, %10 : vector<8x128xf32>
    %27 = arith.mulf %4, %9 : vector<8x128xf32>
    %28 = arith.addf %26, %27 : vector<8x128xf32>
    %29 = arith.addf %25, %11 : vector<8x128xf32>
    %30 = arith.addf %28, %12 : vector<8x128xf32>
    %31 = arith.mulf %29, %29 : vector<8x128xf32>
    %32 = arith.mulf %30, %30 : vector<8x128xf32>
    %33 = arith.addf %31, %32 : vector<8x128xf32>
    %34 = math.sqrt %33 : vector<8x128xf32>
    %35 = arith.mulf %21, %29 : vector<8x128xf32>
    %36 = arith.mulf %22, %30 : vector<8x128xf32>
    %37 = arith.addf %35, %36 : vector<8x128xf32>
    %38 = arith.divf %37, %34 : vector<8x128xf32>
    %39 = arith.mulf %21, %30 : vector<8x128xf32>
    %40 = arith.mulf %22, %29 : vector<8x128xf32>
    %41 = arith.subf %39, %40 : vector<8x128xf32>
    %42 = arith.divf %41, %34 : vector<8x128xf32>
    %c0_5 = arith.constant 0 : index
    %c0_6 = arith.constant 0 : index
    %43 = vector.load %arg4[%c0_5, %c0_6] : memref<8x256xf32, #tpu.memory_space<vmem>>, vector<8x128xf32>
    tpu.vector_store %arg4[%c0_5, %c0_6], %38 {strides = array<i32>} : memref<8x256xf32, #tpu.memory_space<vmem>>, vector<8x128xf32>,
    %c0_7 = arith.constant 0 : index
    %c128 = arith.constant 128 : index
    %44 = vector.load %arg4[%c0_7, %c128] : memref<8x256xf32, #tpu.memory_space<vmem>>, vector<8x128xf32>
    tpu.vector_store %arg4[%c0_7, %c128], %42 {strides = array<i32>} : memref<8x256xf32, #tpu.memory_space<vmem>>, vector<8x128xf32>,
    %45 = arith.mulf %3, %3 : vector<8x128xf32>
    %46 = arith.mulf %4, %4 : vector<8x128xf32>
    %47 = arith.addf %45, %46 : vector<8x128xf32>
    %48 = math.sqrt %47 : vector<8x128xf32>
    %c0_8 = arith.constant 0 : index
    %c0_9 = arith.constant 0 : index
    %49 = vector.load %arg5[%c0_8, %c0_9] : memref<8x128xf32, #tpu.memory_space<vmem>>, vector<8x128xf32>
    tpu.vector_store %arg5[%c0_8, %c0_9], %48 {strides = array<i32>} : memref<8x128xf32, #tpu.memory_space<vmem>>, vector<8x128xf32>,
    %50 = arith.mulf %5, %5 : vector<8x128xf32>
    %51 = arith.mulf %6, %6 : vector<8x128xf32>
    %52 = arith.addf %50, %51 : vector<8x128xf32>
    %53 = arith.mulf %9, %9 : vector<8x128xf32>
    %54 = arith.addf %52, %53 : vector<8x128xf32>
    %55 = arith.mulf %10, %10 : vector<8x128xf32>
    %56 = arith.addf %54, %55 : vector<8x128xf32>
    %57 = arith.mulf %7, %7 : vector<8x128xf32>
    %58 = arith.addf %56, %57 : vector<8x128xf32>
    %59 = arith.mulf %8, %8 : vector<8x128xf32>
    %60 = arith.addf %58, %59 : vector<8x128xf32>
    %61 = arith.mulf %11, %11 : vector<8x128xf32>
    %62 = arith.addf %60, %61 : vector<8x128xf32>
    %63 = arith.mulf %12, %12 : vector<8x128xf32>
    %64 = arith.addf %62, %63 : vector<8x128xf32>
    %65 = math.sqrt %64 : vector<8x128xf32>
    %c0_10 = arith.constant 0 : index
    %c0_11 = arith.constant 0 : index
    %66 = vector.load %arg6[%c0_10, %c0_11] : memref<8x128xf32, #tpu.memory_space<vmem>>, vector<8x128xf32>
    tpu.vector_store %arg6[%c0_10, %c0_11], %65 {strides = array<i32>} : memref<8x128xf32, #tpu.memory_space<vmem>>, vector<8x128xf32>,
    %67 = arith.mulf %13, %13 : vector<8x128xf32>
    %68 = arith.mulf %14, %14 : vector<8x128xf32>
    %69 = arith.addf %67, %68 : vector<8x128xf32>
    %70 = math.sqrt %69 : vector<8x128xf32>
    %c0_12 = arith.constant 0 : index
    %c0_13 = arith.constant 0 : index
    %71 = vector.load %arg7[%c0_12, %c0_13] : memref<8x128xf32, #tpu.memory_space<vmem>>, vector<8x128xf32>
    tpu.vector_store %arg7[%c0_12, %c0_13], %70 {strides = array<i32>} : memref<8x128xf32, #tpu.memory_space<vmem>>, vector<8x128xf32>,
    return
  }
  func.func @transform_0(%arg0: i32) -> (i32, i32) {
    %c0_i32 = arith.constant 0 : i32
    %c0_i32_0 = arith.constant 0 : i32
    %c0_i32_1 = arith.constant 0 : i32
    return %c0_i32, %c0_i32_0 : i32, i32
  }
  func.func @transform_1(%arg0: i32) -> (i32, i32) {
    %c0_i32 = arith.constant 0 : i32
    %c0_i32_0 = arith.constant 0 : i32
    %c0_i32_1 = arith.constant 0 : i32
    return %c0_i32, %c0_i32_0 : i32, i32
  }
  func.func @transform_2(%arg0: i32) -> (i32, i32) {
    %c0_i32 = arith.constant 0 : i32
    %c0_i32_0 = arith.constant 0 : i32
    %c0_i32_1 = arith.constant 0 : i32
    return %c0_i32, %c0_i32_0 : i32, i32
  }
  func.func @transform_3(%arg0: i32) -> (i32, i32) {
    %c0_i32 = arith.constant 0 : i32
    %c0_i32_0 = arith.constant 0 : i32
    %c0_i32_1 = arith.constant 0 : i32
    return %c0_i32, %c0_i32_0 : i32, i32
  }
  func.func @transform_4(%arg0: i32) -> (i32, i32) {
    %c0_i32 = arith.constant 0 : i32
    %c0_i32_0 = arith.constant 0 : i32
    %c0_i32_1 = arith.constant 0 : i32
    return %c0_i32, %c0_i32_0 : i32, i32
  }
  func.func @transform_5(%arg0: i32) -> (i32, i32) {
    %c0_i32 = arith.constant 0 : i32
    %c0_i32_0 = arith.constant 0 : i32
    %c0_i32_1 = arith.constant 0 : i32
    return %c0_i32, %c0_i32_0 : i32, i32
  }
  func.func @transform_6(%arg0: i32) -> (i32, i32) {
    %c0_i32 = arith.constant 0 : i32
    %c0_i32_0 = arith.constant 0 : i32
    %c0_i32_1 = arith.constant 0 : i32
    return %c0_i32, %c0_i32_0 : i32, i32
  }
}

</mosaic_0001>

<bundles_post_ra>
// kernel: tpu_custom_call.1
= control target key start
LH: loop header
LB: loop body
LE: loop exit
PB: predicated region body
PF: predicated region fallthrough
CT: control target
= control target key end

     0   :  { %12 = vsyncpa [#allocation3], 0  ;;  %s544_s0 = inlined_call_operand.hbm [shape: f32[8,256], index: 0, kind: input, shape index: {}]   ;;  %s545_s1 = inlined_call_operand.hbm [shape: f32[8,1024], index: 1, kind: input, shape index: {}]   ;;  %s546_s2 = inlined_call_operand.hbm [shape: f32[8,256], index: 2, kind: input, shape index: {}]   ;;  %s547_s3 = inlined_call_operand.hbm [shape: f32[8,256], index: 3, kind: output, shape index: {0}]   ;;  %s548_s4 = inlined_call_operand.hbm [shape: f32[8,128], index: 4, kind: output, shape index: {1}]   ;;  %s549_s5 = inlined_call_operand.hbm [shape: f32[8,128], index: 5, kind: output, shape index: {2}]   ;;  %s550_s6 = inlined_call_operand.hbm [shape: f32[8,128], index: 6, kind: output, shape index: {3}]  }
   0x1   :  { %13 = vsyncpa [#allocation6], 0 }
   0x2   :  { %14 = vsyncpa [#allocation4], 0 }
   0x3   :  { %15 = vsyncpa [#allocation10], 0 }
   0x4   :  { %16 = vsyncpa [#allocation13], 0  ;;  %s388_s21 = smov [#allocation5]   ;;  %s389_s23 = smov [#allocation2]  }
   0x5   :  { %s33_s22 = sshll.u32 %s388_s21, 4  ;;  %s23_s24 = sshll.u32 %s389_s23, 4  ;;  %s34_s22 = int_to_ptr.vmem [resolvable:$true] %s33_s22  ;;  %s24_s24 = int_to_ptr.vmem [resolvable:$true] %s23_s24 }
   0x6   :  { %s224_s27 = scalar_lea.hbm %s545_s1, 1024 }
   0x7   :  { %p225_p0 = scmp.ne.s32.totalorder %s545_s1, %s224_s27  ;;  %p228_p1 = scmp.lt.u32.totalorder %s224_s27, %s545_s1 }
   0x9   :  { %p230_p2 = pnand %p228_p1, %p225_p0 }
   0xb   :  { %233 = shalt.err (!%p230_p2)
}
   0xc   :  { %s234_s8 = scalar_lea.vmem %s34_s22, 1024  ;;  %p239_p4 = scmp.lt.s32.totalorder %s34_s22, %s34_s22 }
   0xd   :  { %p235_p3 = scmp.ne.s32.totalorder %s34_s22, %s234_s8  ;;  %p240_p5 = scmp.lt.s32.totalorder %s234_s8, %s234_s8 }
   0xf   :  { %p241_p6 = por %p240_p5, %p239_p4 }
  0x11   :  { %p242_p7 = pnand %p241_p6, %p235_p3 }
  0x13   :  { %245 = shalt.err (!%p242_p7)
}
  0x14   :  { %36 = dma.hbm_to_vmem [thread:$0]  %s545_s1, 1024, %s34_s22, [#allocation6]  }
  0x15   :  { %s246_s13 = scalar_lea.hbm %s544_s0, 256 }
  0x16   :  { %p247_p8 = scmp.ne.s32.totalorder %s544_s0, %s246_s13  ;;  %p250_p9 = scmp.lt.u32.totalorder %s246_s13, %s544_s0 }
  0x18   :  { %p252_p10 = pnand %p250_p9, %p247_p8 }
  0x1a   :  { %255 = shalt.err (!%p252_p10)
}
  0x1b   :  { %s256_s18 = scalar_lea.vmem %s24_s24, 256  ;;  %p261_p12 = scmp.lt.s32.totalorder %s24_s24, %s24_s24 }
  0x1c   :  { %p257_p11 = scmp.ne.s32.totalorder %s24_s24, %s256_s18  ;;  %p262_p13 = scmp.lt.s32.totalorder %s256_s18, %s256_s18 }
  0x1e   :  { %p263_p0 = por %p262_p13, %p261_p12 }
  0x20   :  { %p264_p1 = pnand %p263_p0, %p257_p11 }
  0x22   :  { %267 = shalt.err (!%p264_p1)
}
  0x23   :  { %26 = dma.hbm_to_vmem [thread:$0]  %s544_s0, 256, %s24_s24, [#allocation3]  }
  0x24   :  { %s390_s20 = smov [#allocation7]   ;;  %s268_s25 = scalar_lea.hbm %s546_s2, 256 }
  0x25   :  { %s43_s21 = sshll.u32 %s390_s20, 4  ;;  %p269_p2 = scmp.ne.s32.totalorder %s546_s2, %s268_s25  ;;  %s44_s21 = int_to_ptr.vmem [resolvable:$true] %s43_s21 }
  0x26   :  { %p272_p3 = scmp.lt.u32.totalorder %s268_s25, %s546_s2 }
  0x28   :  { %p274_p4 = pnand %p272_p3, %p269_p2 }
  0x2a   :  { %277 = shalt.err (!%p274_p4)
}
  0x2b   :  { %s278_s30 = scalar_lea.vmem %s44_s21, 256  ;;  %p283_p6 = scmp.lt.s32.totalorder %s44_s21, %s44_s21 }
  0x2c   :  { %p279_p5 = scmp.ne.s32.totalorder %s44_s21, %s278_s30  ;;  %p284_p7 = scmp.lt.s32.totalorder %s278_s30, %s278_s30 }
  0x2e   :  { %p285_p8 = por %p284_p7, %p283_p6 }
  0x30   :  { %p286_p9 = pnand %p285_p8, %p279_p5 }
  0x32   :  { %289 = shalt.err (!%p286_p9)
}
  0x33   :  { %46 = dma.hbm_to_vmem [thread:$0]  %s546_s2, 256, %s44_s21, [#allocation6]  }
  0x34   :  { %378 = dma.done.wait [#allocation3], 256  }
  0x35   :  { %379 = vsyncadd [#allocation3], 4294967040 }
  0x36   :  { %380 = dma.done.wait [#allocation6], 1280  }
  0x37   :  { %381 = vsyncadd [#allocation6], 4294966016  ;;  %v56_v0 = vld [vmem:[#allocation2] sm:$0xff]  ;;  %v57_v1 = vld [vmem:[#allocation2 + $0x8] sm:$0xff]  ;;  %s391_s2 = smov [#allocation9]  }
  0x38   :  { %v58_v2 = vld [vmem:[#allocation5] sm:$0xff]  ;;  %v105_v3 = vmul.f32 %v56_v0, %v56_v0  ;;  %v106_v4 = vmul.f32 %v57_v1, %v57_v1  ;;  %v59_v5 = vld [vmem:[#allocation5 + $0x8] sm:$0xff]  ;;  %v64_v15 = vld [vmem:[#allocation5 + $0x30] sm:$0xff]  ;;  %s166_s7 = sshll.u32 %s391_s2, 4  ;;  %s167_s7 = int_to_ptr.vmem [resolvable:$true] %s166_s7 }
  0x39   :  { %v62_v6 = vld [vmem:[#allocation5 + $0x20] sm:$0xff]  ;;  %v63_v7 = vld [vmem:[#allocation5 + $0x28] sm:$0xff]  ;;  %v116_v8 = vmul.f32 %v58_v2, %v58_v2  ;;  %v117_v9 = vmul.f32 %v59_v5, %v59_v5  ;;  %v65_v16 = vld [vmem:[#allocation5 + $0x38] sm:$0xff]  ;;  %v127_v39 = vmul.f32 %v64_v15, %v64_v15  ;;  %v68_v47 = vmul.f32 %v58_v2, %v56_v0  ;;  %s290_s8 = scalar_lea.vmem %s167_s7, 128  ;;  %p295_p11 = scmp.lt.s32.totalorder %s167_s7, %s167_s7 }
  0x3a   :  { %v107_v10 = vadd.f32 %v106_v4, %v105_v3  ;;  %v76_v11 = vmul.f32 %v62_v6, %v56_v0  ;;  %v77_v12 = vmul.f32 %v63_v7, %v57_v1  ;;  %v79_v13 = vmul.f32 %v63_v7, %v56_v0  ;;  %v466_v18 = vld [vmem:[#allocation5 + $0x10] sm:$0xff]  ;;  %v66_v21 = vld [vmem:[#allocation7] sm:$0xff]  ;;  %v67_v22 = vld [vmem:[#allocation7 + $0x8] sm:$0xff]  ;;  %p291_p10 = scmp.ne.s32.totalorder %s167_s7, %s290_s8  ;;  %p296_p12 = scmp.lt.s32.totalorder %s290_s8, %s290_s8 }
  0x3b   :  { %v80_v14 = vmul.f32 %v62_v6, %v57_v1  ;;  %v118_v17 = vadd.f32 %v117_v9, %v116_v8  ;;  %v119_v23 = vmul.f32 %v62_v6, %v62_v6  ;;  %v121_v24 = vmul.f32 %v63_v7, %v63_v7  ;;  %v468_v25 = vld [vmem:[#allocation5 + $0x18] sm:$0xff] }
  0x3c   :  { %214 = vrsqrt.f32 %v107_v10  ;;  %v78_v19 = vsub.f32 %v76_v11, %v77_v12  ;;  %v123_v29 = vmul.f32 %v466_v18, %v466_v18  ;;  %v139_v30 = vmul.f32 %v66_v21, %v66_v21  ;;  %p297_p13 = por %p296_p12, %p295_p11 }
  0x3d   :  { %v81_v20 = vadd.f32 %v80_v14, %v79_v13  ;;  %v120_v28 = vadd.f32 %v119_v23, %v118_v17  ;;  %v140_v31 = vmul.f32 %v67_v22, %v67_v22  ;;  %v125_v35 = vmul.f32 %v468_v25, %v468_v25 }
  0x3e   :  { %v470_v26 = vadd.f32 %v78_v19, %v64_v15  ;;  %vm110_vm0 = vcmp.eq.f32.partialorder %v107_v10, inf  ;;  %v113_v41 = vand.u32 2147483648, %v107_v10  ;;  %v129_v43 = vmul.f32 %v65_v16, %v65_v16  ;;  %p298_p0 = pnand %p297_p13, %p291_p10 }
  0x3f   :  { %v472_v27 = vadd.f32 %v81_v20, %v65_v16  ;;  %v122_v34 = vadd.f32 %v121_v24, %v120_v28  ;;  %v141_v36 = vadd.f32 %v140_v31, %v139_v30  ;;  %vm112_vm1 = vcmp.eq.f32.partialorder %v107_v10, 0.0 }
  0x40   :  { %v84_v32 = vmul.f32 %v470_v26, %v470_v26  ;;  %v72_v48 = vmul.f32 %v58_v2, %v57_v1  ;;  %v69_v50 = vmul.f32 %v59_v5, %v57_v1  ;;  %v71_v51 = vmul.f32 %v59_v5, %v56_v0 }
  0x41   :  { %v85_v33 = vmul.f32 %v472_v27, %v472_v27  ;;  %v124_v38 = vadd.f32 %v123_v29, %v122_v34  ;;  %216 = vrsqrt.f32 %v141_v36 }
  0x43   :  { %v86_v37 = vadd.f32 %v85_v33, %v84_v32  ;;  %v126_v42 = vadd.f32 %v125_v35, %v124_v38 }
  0x45   :  { %218 = vrsqrt.f32 %v86_v37  ;;  %v128_v45 = vadd.f32 %v127_v39, %v126_v42 }
  0x46   :  { %v215_v40 = vpop.eup %214 }
  0x47   :  { %v109_v44 = vmul.f32 %v215_v40, %v107_v10  ;;  %v482_v52 = vadd.f32 %v129_v43, %v128_v45 }
  0x49   :  { %v111_v46 = vsel %vm110_vm0, %v107_v10, %v109_v44  ;;  %220 = vrsqrt.f32 %v482_v52 }
  0x4a   :  { %v114_v49 = vsel %vm112_vm1, %v113_v41, %v111_v46 }
  0x4b   :  { %115 = vst [vmem:[#allocation9] sm:$0xff] %v114_v49 }
  0x4c   :  { %301 = shalt.err (!%p298_p0)
}
  0x4d   :  { %s302_s11 = scalar_lea.hbm %s548_s4, 128 }
  0x4e   :  { %p303_p1 = scmp.ne.s32.totalorder %s548_s4, %s302_s11  ;;  %p306_p2 = scmp.lt.u32.totalorder %s302_s11, %s548_s4 }
  0x50   :  { %p308_p3 = pnand %p306_p2, %p303_p1 }
  0x52   :  { %311 = shalt.err (!%p308_p3)
}
  0x53   :  { %169 = dma.vmem_to_hbm [thread:$0]  %s167_s7, 128, %s548_s4, [#allocation10]   ;;  %v217_v53 = vpop.eup %216  ;;  %v70_v54 = vsub.f32 %v68_v47, %v69_v50  ;;  %v73_v55 = vadd.f32 %v72_v48, %v71_v51  ;;  %vm144_vm2 = vcmp.eq.f32.partialorder %v141_v36, inf  ;;  %v147_v56 = vand.u32 2147483648, %v141_v36 }
  0x54   :  { %s392_s18 = smov [#allocation12]   ;;  %v219_v57 = vpop.eup %218  ;;  %vm89_vm3 = vcmp.eq.f32.partialorder %v86_v37, inf  ;;  %v92_v58 = vand.u32 2147483648, %v86_v37  ;;  %v143_v59 = vmul.f32 %v217_v53, %v141_v36  ;;  %vm146_vm4 = vcmp.eq.f32.partialorder %v141_v36, 0.0 }
  0x55   :  { %s186_s1 = sshll.u32 %s392_s18, 4  ;;  %v88_v60 = vmul.f32 %v219_v57, %v86_v37  ;;  %vm91_vm5 = vcmp.eq.f32.partialorder %v86_v37, 0.0  ;;  %v74_v62 = vadd.f32 %v70_v54, %v466_v18  ;;  %v75_v63 = vadd.f32 %v73_v55, %v468_v25  ;;  %s187_s1 = int_to_ptr.vmem [resolvable:$true] %s186_s1 }
  0x56   :  { %v145_v61 = vsel %vm144_vm2, %v141_v36, %v143_v59  ;;  %s312_s4 = scalar_lea.vmem %s187_s1, 128  ;;  %p317_p5 = scmp.lt.s32.totalorder %s187_s1, %s187_s1 }
  0x57   :  { %v90_v0 = vsel %vm89_vm3, %v86_v37, %v88_v60  ;;  %v148_v1 = vsel %vm146_vm4, %v147_v56, %v145_v61  ;;  %p313_p4 = scmp.ne.s32.totalorder %s187_s1, %s312_s4  ;;  %p318_p6 = scmp.lt.s32.totalorder %s312_s4, %s312_s4 }
  0x58   :  { %v93_v2 = vsel %vm91_vm5, %v92_v58, %v90_v0  ;;  %149 = vst [vmem:[#allocation12] sm:$0xff] %v148_v1 }
  0x59   :  { %222 = vrcp.f32 %v93_v2  ;;  %p319_p7 = por %p318_p6, %p317_p5 }
  0x5b   :  { %p320_p8 = pnand %p319_p7, %p313_p4 }
  0x5d   :  { %323 = shalt.err (!%p320_p8)
}
  0x5e   :  { %s324_s21 = scalar_lea.hbm %s550_s6, 128 }
  0x5f   :  { %p325_p9 = scmp.ne.s32.totalorder %s550_s6, %s324_s21  ;;  %p328_p10 = scmp.lt.u32.totalorder %s324_s21, %s550_s6 }
  0x61   :  { %p330_p11 = pnand %p328_p10, %p325_p9 }
  0x63   :  { %333 = shalt.err (!%p330_p11)
}
  0x64   :  { %189 = dma.vmem_to_hbm [thread:$0]  %s187_s1, 128, %s550_s6, [#allocation13]   ;;  %v221_v3 = vpop.eup %220  ;;  %v94_v4 = vmul.f32 %v470_v26, %v74_v62  ;;  %v95_v5 = vmul.f32 %v472_v27, %v75_v63  ;;  %vm133_vm6 = vcmp.eq.f32.partialorder %v482_v52, inf  ;;  %v136_v6 = vand.u32 2147483648, %v482_v52 }
  0x65   :  { %s393_s29 = smov [#allocation11]   ;;  %v99_v7 = vmul.f32 %v472_v27, %v74_v62  ;;  %v100_v8 = vmul.f32 %v470_v26, %v75_v63  ;;  %v132_v9 = vmul.f32 %v221_v3, %v482_v52  ;;  %vm135_vm7 = vcmp.eq.f32.partialorder %v482_v52, 0.0  ;;  %s394_s6 = smov [#allocation8]  }
  0x66   :  { %s176_s30 = sshll.u32 %s393_s29, 4  ;;  %v96_v12 = vadd.f32 %v95_v5, %v94_v4  ;;  %s156_s0 = sshll.u32 %s394_s6, 4  ;;  %s177_s30 = int_to_ptr.vmem [resolvable:$true] %s176_s30  ;;  %s157_s0 = int_to_ptr.vmem [resolvable:$true] %s156_s0 }
  0x67   :  { %v134_v10 = vsel %vm133_vm6, %v482_v52, %v132_v9  ;;  %v101_v13 = vsub.f32 %v99_v7, %v100_v8  ;;  %s334_s24 = scalar_lea.vmem %s177_s30, 128  ;;  %p339_p13 = scmp.lt.s32.totalorder %s177_s30, %s177_s30 }
  0x68   :  { %v137_v11 = vsel %vm135_vm7, %v136_v6, %v134_v10  ;;  %p335_p12 = scmp.ne.s32.totalorder %s177_s30, %s334_s24  ;;  %p340_p0 = scmp.lt.s32.totalorder %s334_s24, %s334_s24 }
  0x69   :  { %138 = vst [vmem:[#allocation11] sm:$0xff] %v137_v11 }
  0x6a   :  { %p341_p1 = por %p340_p0, %p339_p13 }
  0x6c   :  { %p342_p2 = pnand %p341_p1, %p335_p12 }
  0x6e   :  { %345 = shalt.err (!%p342_p2)
}
  0x6f   :  { %s346_s8 = scalar_lea.hbm %s549_s5, 128 }
  0x70   :  { %p347_p3 = scmp.ne.s32.totalorder %s549_s5, %s346_s8  ;;  %p350_p4 = scmp.lt.u32.totalorder %s346_s8, %s549_s5 }
  0x72   :  { %p352_p5 = pnand %p350_p4, %p347_p3 }
  0x74   :  { %355 = shalt.err (!%p352_p5)
}
  0x75   :  { %179 = dma.vmem_to_hbm [thread:$0]  %s177_s30, 128, %s549_s5, [#allocation10]   ;;  %v223_v14 = vpop.eup %222 }
  0x76   :  { %v98_v15 = vmul.f32 %v223_v14, %v96_v12  ;;  %v102_v16 = vmul.f32 %v223_v14, %v101_v13  ;;  %s356_s15 = scalar_lea.vmem %s157_s0, 256  ;;  %p361_p7 = scmp.lt.s32.totalorder %s157_s0, %s157_s0 }
  0x77   :  { %p357_p6 = scmp.ne.s32.totalorder %s157_s0, %s356_s15  ;;  %p362_p8 = scmp.lt.s32.totalorder %s356_s15, %s356_s15 }
  0x78   :  { %103 = vst [vmem:[#allocation8] sm:$0xff] %v98_v15  ;;  %104 = vst [vmem:[#allocation8 + $0x8] sm:$0xff] %v102_v16 }
  0x79   :  { %p363_p9 = por %p362_p8, %p361_p7 }
  0x7b   :  { %p364_p10 = pnand %p363_p9, %p357_p6 }
  0x7d   :  { %367 = shalt.err (!%p364_p10)
}
  0x7e   :  { %s368_s18 = scalar_lea.hbm %s547_s3, 256 }
  0x7f   :  { %p369_p11 = scmp.ne.s32.totalorder %s547_s3, %s368_s18  ;;  %p372_p12 = scmp.lt.u32.totalorder %s368_s18, %s547_s3 }
  0x81   :  { %p374_p13 = pnand %p372_p12, %p369_p11 }
  0x83   :  { %377 = shalt.err (!%p374_p13)
}
  0x84   :  { %159 = dma.vmem_to_hbm [thread:$0]  %s157_s0, 256, %s547_s3, [#allocation4]  }
  0x85   :  { %382 = dma.done.wait [#allocation4], 256  }
  0x86   :  { %383 = vsyncadd [#allocation4], 4294967040 }
  0x87   :  { %384 = dma.done.wait [#allocation10], 256  }
  0x88   :  { %385 = vsyncadd [#allocation10], 4294967040 }
  0x89   :  { %386 = dma.done.wait [#allocation13], 128  }
  0x8a   :  { %387 = vsyncadd [#allocation13], 4294967168 }
  0x8b   :  { %202 = vsyncpa [#allocation3], 1 }
  0x8c   :  { %203 = vsyncpa [#allocation6], 1 }
  0x8d   :  { %204 = vsyncpa [#allocation4], 1 }
  0x8e   :  { %205 = vsyncpa [#allocation10], 1 }
  0x8f   :  { %206 = vsyncpa [#allocation13], 1 }

</bundles_post_ra>
